<compile_context>
chip_gen: v5e
topology: v5e:2x2
jax: 0.10.0
libtpu: 0.0.40
codegen_flags: <defaults>
</compile_context>

<pallas_src>
import functools

import jax
import jax.numpy as jnp
from jax.experimental import pallas as pl
from jax.experimental.pallas import tpu as pltpu

N_BONES = 8
N_BLEND = 55
N_COEFF = 9 * N_BONES + N_BLEND + 1          # 72 + 55 + 1 = 128
PARENTS = [None] + list(range(N_BONES - 1))  # synthetic chain hierarchy


# ----------------------------------------------------------------------------
# Small JAX helpers (glue)
# ----------------------------------------------------------------------------
def rotvec_to_rotmat(rv):
    """Rodrigues formula, rv: [..., 3] -> [..., 3, 3] (roma.rotvec_to_rotmat)."""
    angle = jnp.linalg.norm(rv, axis=-1, keepdims=True)            # [..., 1]
    axis = rv / jnp.maximum(angle, 1e-8)
    x, y, z = axis[..., 0], axis[..., 1], axis[..., 2]
    zero = jnp.zeros_like(x)
    K = jnp.stack([zero, -z, y, z, zero, -x, -y, x, zero], axis=-1)
    K = K.reshape(rv.shape[:-1] + (3, 3))
    a = angle[..., None]                                            # [..., 1, 1]
    s, c = jnp.sin(a), jnp.cos(a)
    eye = jnp.eye(3, dtype=rv.dtype)
    return eye + s * K + (1.0 - c) * (K @ K)


def kinematic_chain(theta_mat, L2P, parents):
    """update_L2W_transformation_pose over all bones. theta_mat: [B,Nb,3,3]."""
    B = theta_mat.shape[0]
    eye4 = jnp.eye(4, dtype=theta_mat.dtype)
    L2W = [None] * N_BONES
    for i in range(N_BONES):
        local = jnp.tile(eye4[None], (B, 1, 1))
        local = local.at[:, :3, :3].set(theta_mat[:, i])
        Ti = jnp.einsum('ij,bjk->bik', L2P[i], local)
        if parents[i] is not None:
            Ti = jnp.einsum('bij,bjk->bik', L2W[parents[i]], Ti)
        L2W[i] = Ti
    return jnp.stack(L2W, axis=1)                                   # [B, Nb, 4, 4]


def rest_w2l(L2P, parents):
    """Synthetic W2L_transformation: inverse of rest-pose L2W (original code
    inverts an unfilled buffer; rest-pose inverse is the standard semantics)."""
    L2W = [None] * N_BONES
    for i in range(N_BONES):
        Ti = L2P[i]
        if parents[i] is not None:
            Ti = L2W[parents[i]] @ Ti
        L2W[i] = Ti
    return jnp.linalg.inv(jnp.stack(L2W, axis=0))[None]             # [1, Nb, 4, 4]


def grid_sample_border_bilinear(img, gridxy):
    """F.grid_sample(..., bilinear, border, align_corners=True) equivalent.
    img: [H, W] ; gridxy: [B, Nv, 2] in [-1, 1] -> [B, Nv]."""
    H, W_img = img.shape
    gx, gy = gridxy[..., 0], gridxy[..., 1]
    x = jnp.clip((gx + 1.0) * 0.5 * (W_img - 1), 0.0, W_img - 1)
    y = jnp.clip((gy + 1.0) * 0.5 * (H - 1), 0.0, H - 1)
    x0 = jnp.floor(x)
    y0 = jnp.floor(y)
    wx = x - x0
    wy = y - y0
    x0i = x0.astype(jnp.int32)
    y0i = y0.astype(jnp.int32)
    x1i = jnp.clip(x0i + 1, 0, W_img - 1)
    y1i = jnp.clip(y0i + 1, 0, H - 1)
    v00 = img[y0i, x0i]
    v01 = img[y0i, x1i]
    v10 = img[y1i, x0i]
    v11 = img[y1i, x1i]
    return (v00 * (1 - wx) * (1 - wy) + v01 * wx * (1 - wy)
            + v10 * (1 - wx) * wy + v11 * wx * wy)


# ----------------------------------------------------------------------------
# Pallas kernel: fused per-vertex hot path
#   T_theta = coeff_big @ basis             (bf16 MXU, f32 accumulate)
#   M_rows  = A12 @ W                       (bf16 MXU, f32 accumulate)
#   out[b,i] = sum_j M[b,i,j]*(T_theta[b,j] + dist[b]*ts[j]) + M[b,i,3]
# ----------------------------------------------------------------------------
def hack_kernel(coeff_ref, a_ref, basis_ref, w_ref, dist_ref, ts_ref,
                out_ref, *, B):
    # bf16 x bf16 MXU matmuls with f32 accumulation (no in-kernel upcast copies).
    t_theta = jnp.dot(coeff_ref[...], basis_ref[...],
                      preferred_element_type=jnp.float32)            # [3B, tv] f32
    m_rows = jnp.dot(a_ref[...], w_ref[...],
                     preferred_element_type=jnp.float32)             # [12B, tv] f32

    dist = dist_ref[...].astype(jnp.float32)                         # [B, tv]
    ts = ts_ref[...].astype(jnp.float32)                             # [3, tv]

    # Blocked epilogue, contiguous 3-row slabs (A12 rows are j-major so the
    # i=0..2 rows of each column j are contiguous and already in output order).
    for b in range(B):
        m_b = m_rows[12 * b: 12 * b + 12, :]                         # [12, tv]
        acc = m_b[9:12, :]                                           # translation col, [3, tv]
        for j in range(3):
            ttj = (t_theta[3 * b + j: 3 * b + j + 1, :]
                   + dist[b:b + 1, :] * ts[j:j + 1, :])              # [1, tv]
            acc = acc + m_b[3 * j: 3 * j + 3, :] * ttj               # [3, tv]
        out_ref[3 * b: 3 * b + 3, :] = acc                           # contiguous block store


def _pick_tiling(Nv, max_tile_v):
    """Lane tile (multiple of 128, <= max_tile_v) and an even grid-step count
    (>= 2) so the single parallel grid axis load-balances v7x's 2 TensorCores."""
    max_tile_v = max(128, (max_tile_v // 128) * 128)
    steps = max(2, pl.cdiv(Nv, max_tile_v))
    if steps % 2:
        steps += 1
    tile_v = max(128, min(max_tile_v, pl.cdiv(pl.cdiv(Nv, steps), 128) * 128))
    steps = max(2, pl.cdiv(Nv, tile_v))
    if steps % 2:
        steps += 1
    return tile_v, steps


def hack_forward_pallas(theta, tau, alpha, bsw, params, *, max_tile_v=4096):
    B = theta.shape[0]
    L_img, grid_uv = params['L'], params['grid_uv']
    L2P, W2L = params['L2P'], params['W2L']
    basis = params['basis_bf16']                                      # [384, Nv] bf16 (precomputed)
    W_lane = params['W_bf16']                                         # [8, Nv]   bf16 (precomputed)
    ts_rows = params['ts_rows_bf16']                                  # [3, Nv]   bf16 (precomputed)
    Nv = basis.shape[1]
    dtype = jnp.float32

    # --- pose glue (tiny 3x3 / 4x4 math) -----------------------------------
    theta_mat = rotvec_to_rotmat(theta)                               # [B, Nb, 3, 3]
    eye3 = jnp.eye(3, dtype=dtype)
    theta_zero = theta_mat - jnp.concatenate(
        [theta_mat[:, :1], jnp.broadcast_to(eye3, (B, N_BONES - 1, 3, 3))], axis=1)

    L2W_pose = kinematic_chain(theta_mat, L2P, PARENTS)               # [B, Nb, 4, 4]
    W2L2pWs = L2W_pose @ W2L                                          # [B, Nb, 4, 4]
    # j-major row packing: row = 12*b + 3*j + i  (i rows of each column j
    # contiguous and in output order) -> trivial blocked epilogue in-kernel.
    a12 = jnp.transpose(W2L2pWs[:, :, :3, :], (0, 3, 2, 1)).reshape(12 * B, N_BONES)
    a12_bf16 = a12.astype(jnp.bfloat16)

    # --- coefficient packing for the fused matmul ---------------------------
    coeff = jnp.concatenate(
        [theta_zero.reshape(B, 72), bsw, jnp.ones((B, 1), dtype)], axis=1)  # [B, 128]
    coeff_big = jnp.einsum('bc,de->bdce', coeff, eye3).reshape(3 * B, 3 * N_COEFF)
    coeff_bf16 = coeff_big.astype(jnp.bfloat16)

    # TODO(synk): bilinear grid_sample is a per-vertex gather with no clean
    # Pallas TPU equivalent; it is computed in plain JAX glue and fed as `dist`.
    shift = jnp.concatenate([jnp.zeros_like(tau), 2.0 * tau], axis=-1)   # F.pad(tau*2,[1,0])
    gridxy = grid_uv[None] + shift[:, None, :]                           # [B, Nv, 2]
    dist = grid_sample_border_bilinear(L_img, gridxy)                    # [B, Nv]
    dist_bf16 = (dist * alpha).astype(jnp.bfloat16)                      # alpha folded, bf16 stream

    # --- tiling / padding ----------------------------------------------------
    tile_v, grid_steps = _pick_tiling(Nv, max_tile_v)
    Nv_pad = grid_steps * tile_v
    if Nv_pad != Nv:
        pad = Nv_pad - Nv
        basis = jnp.pad(basis, ((0, 0), (0, pad)))
        W_lane = jnp.pad(W_lane, ((0, 0), (0, pad)))
        dist_bf16 = jnp.pad(dist_bf16, ((0, 0), (0, pad)))
        ts_rows = jnp.pad(ts_rows, ((0, 0), (0, pad)))

    # --- fused per-vertex Pallas kernel --------------------------------------
    out = pl.pallas_call(
        functools.partial(hack_kernel, B=B),
        out_shape=jax.ShapeDtypeStruct((3 * B, Nv_pad), jnp.float32),
        grid_spec=pltpu.PrefetchScalarGridSpec(
            num_scalar_prefetch=0,
            grid=(grid_steps,),
            in_specs=[
                pl.BlockSpec((3 * B, 3 * N_COEFF), lambda i: (0, 0)),   # coeff (bf16)
                pl.BlockSpec((12 * B, N_BONES), lambda i: (0, 0)),      # A12 (bf16)
                pl.BlockSpec((3 * N_COEFF, tile_v), lambda i: (0, i)),  # basis (bf16)
                pl.BlockSpec((N_BONES, tile_v), lambda i: (0, i)),      # W (bf16)
                pl.BlockSpec((B, tile_v), lambda i: (0, i)),            # dist*alpha (bf16)
                pl.BlockSpec((3, tile_v), lambda i: (0, i)),            # ts rows (bf16)
            ],
            out_specs=pl.BlockSpec((3 * B, tile_v), lambda i: (0, i)),
        ),
        compiler_params=pltpu.CompilerParams(
            dimension_semantics=("parallel",),
            vmem_limit_bytes=32 * 1024 * 1024),
    )(coeff_bf16, a12_bf16, basis, W_lane, dist_bf16, ts_rows)

    out = out[:, :Nv]
    T_transformed = out.reshape(B, 3, Nv).transpose(0, 2, 1)          # [B, Nv, 3]
    return {'T_transformed': T_transformed}


# ----------------------------------------------------------------------------
# Pure-JAX f32 reference (mirrors the PyTorch forward einsum-for-einsum)
# ----------------------------------------------------------------------------
def hack_forward_reference(theta, tau, alpha, bsw, params):
    B = theta.shape[0]
    Nv = params['T'].shape[0]
    theta_mat = rotvec_to_rotmat(theta)
    eye3 = jnp.eye(3, dtype=jnp.float32)
    theta_zero = theta_mat - jnp.concatenate(
        [theta_mat[:, :1], jnp.broadcast_to(eye3, (B, N_BONES - 1, 3, 3))], axis=1)
    P_theta = jnp.einsum('bnij,nijvd->bvd', theta_zero, params['P'])
    L2W_pose = kinematic_chain(theta_mat, params['L2P'], PARENTS)
    W2L2pWs = L2W_pose @ params['W2L']
    M = jnp.einsum('bnij,nv->bvij', W2L2pWs, params['W'])
    shift = jnp.concatenate([jnp.zeros_like(tau), 2.0 * tau], axis=-1)
    gridxy = params['grid_uv'][None] + shift[:, None, :]
    dist = grid_sample_border_bilinear(params['L'], gridxy)
    L_tau = dist[:, :, None] * params['ts'][None]
    T_theta = (params['T'][None] + P_theta
               + jnp.einsum('kvd,bk->bvd', params['E'], bsw)
               + L_tau * alpha[:, :, None])
    hom = jnp.concatenate([T_theta, jnp.ones((B, Nv, 1), jnp.float32)], axis=-1)
    return jnp.einsum('bvij,bvj->bvi', M, hom)[:, :, :3]


# ----------------------------------------------------------------------------
# Deterministic synthetic parameters + kernel-side precompute + driver
# ----------------------------------------------------------------------------
def make_params(key, Nv, img_hw=64):
    ks = jax.random.split(key, 10)
    Wmap = jax.random.uniform(ks[0], (N_BONES, Nv), jnp.float32, 0.1, 1.0)
    Wmap = Wmap / Wmap.sum(axis=0, keepdims=True)
    T = jax.random.normal(ks[1], (Nv, 3), jnp.float32)
    P = 0.05 * jax.random.normal(ks[2], (N_BONES, 3, 3, Nv, 3), jnp.float32)
    E = 0.05 * jax.random.normal(ks[3], (N_BLEND, Nv, 3), jnp.float32)
    ts = 0.1 * jax.random.normal(ks[4], (Nv, 3), jnp.float32)
    L_img = jax.random.uniform(ks[5], (img_hw, img_hw), jnp.float32)
    grid_uv = jax.random.uniform(ks[6], (Nv, 2), jnp.float32, -0.95, 0.95)
    rv = 0.2 * jax.random.normal(ks[7], (N_BONES, 3), jnp.float32)
    tr = 0.5 * jax.random.normal(ks[8], (N_BONES, 3), jnp.float32)
    R = rotvec_to_rotmat(rv)
    L2P = (jnp.zeros((N_BONES, 4, 4), jnp.float32)
           .at[:, :3, :3].set(R).at[:, :3, 3].set(tr).at[:, 3, 3].set(1.0))
    W2L = rest_w2l(L2P, PARENTS)

    # ---- precomputed, kernel-ready layouts (static; built once, not per call)
    basis = jnp.concatenate([
        jnp.transpose(P, (0, 1, 2, 4, 3)).reshape(72, 3, Nv),         # P[n,i,j,v,d] -> [72,3,Nv]
        jnp.transpose(E, (0, 2, 1)),                                  # E[k,v,d]     -> [55,3,Nv]
        T.T[None],                                                    # T[v,d]       -> [1,3,Nv]
    ], axis=0).reshape(3 * N_COEFF, Nv)
    basis_bf16 = basis.astype(jnp.bfloat16)
    W_bf16 = Wmap.astype(jnp.bfloat16)
    ts_rows_bf16 = ts.T.astype(jnp.bfloat16)                          # [3, Nv]

    return {'W': Wmap, 'T': T, 'P': P, 'E': E, 'ts': ts, 'L': L_img,
            'grid_uv': grid_uv, 'L2P': L2P, 'W2L': W2L,
            'basis_bf16': basis_bf16, 'W_bf16': W_bf16,
            'ts_rows_bf16': ts_rows_bf16}


if __name__ == "__main__":
    B, Nv = 2, 512
    key = jax.random.PRNGKey(0)
    kp, k1, k2, k3, k4 = jax.random.split(key, 5)
    params = make_params(kp, Nv)

    theta = 0.3 * jax.random.normal(k1, (B, N_BONES, 3), jnp.float32)
    tau = 0.05 * jax.random.normal(k2, (B, 1), jnp.float32)
    alpha = jax.random.uniform(k3, (B, 1), jnp.float32)
    bsw = 0.1 * jax.random.normal(k4, (B, N_BLEND), jnp.float32)

    out = hack_forward_pallas(theta, tau, alpha, bsw, params)
    T_transformed = jax.block_until_ready(out['T_transformed'])

    ref = hack_forward_reference(theta, tau, alpha, bsw, params)
    max_err = float(jnp.max(jnp.abs(T_transformed - ref)))
    # bf16 streaming/compute of O(1-4)-magnitude rest positions, pose transforms
    # and weights bounds per-element abs error at ~1e-2 scale vs the f32 reference.
    assert max_err < 1e-1, f"mismatch vs reference: {max_err}"
    print("KERNEL_OK")
</pallas_src>

<mosaic_0001>
module attributes {stable_mosaic.version = 11 : i64} {
  func.func @hack_kernel(%arg0: i32, %arg1: memref<6x384xbf16, #tpu.memory_space<vmem>>, %arg2: memref<24x8xbf16, #tpu.memory_space<vmem>>, %arg3: memref<384x256xbf16, #tpu.memory_space<vmem>>, %arg4: memref<8x256xbf16, #tpu.memory_space<vmem>>, %arg5: memref<2x256xbf16, #tpu.memory_space<vmem>>, %arg6: memref<3x256xbf16, #tpu.memory_space<vmem>>, %arg7: memref<6x256xf32, #tpu.memory_space<vmem>>) attributes {dimension_semantics = [#tpu.dimension_semantics<parallel>], iteration_bounds = array<i64: 2>, scalar_prefetch = 0 : i64, scratch_operands = 0 : i64, tpu.core_type = #tpu.core_type<tc>, window_params = [{pipeline_mode = #tpu.pipeline_mode<synchronous>, transform_indices = @transform_0, window_bounds = array<i64: 6, 384>}, {pipeline_mode = #tpu.pipeline_mode<synchronous>, transform_indices = @transform_1, window_bounds = array<i64: 24, 8>}, {transform_indices = @transform_2, window_bounds = array<i64: 384, 256>}, {transform_indices = @transform_3, window_bounds = array<i64: 8, 256>}, {transform_indices = @transform_4, window_bounds = array<i64: 2, 256>}, {transform_indices = @transform_5, window_bounds = array<i64: 3, 256>}, {transform_indices = @transform_6, window_bounds = array<i64: 6, 256>}]} {
    %c0 = arith.constant 0 : index
    %c0_0 = arith.constant 0 : index
    %0 = vector.load %arg1[%c0, %c0_0] : memref<6x384xbf16, #tpu.memory_space<vmem>>, vector<6x384xbf16>
    %c0_1 = arith.constant 0 : index
    %c0_2 = arith.constant 0 : index
    %1 = vector.load %arg3[%c0_1, %c0_2] : memref<384x256xbf16, #tpu.memory_space<vmem>>, vector<384x256xbf16>
    %cst = arith.constant dense<0.000000e+00> : vector<6x256xf32>
    %2 = tpu.matmul %0, %1, %cst {dimension_numbers = #tpu.dot_dimension_numbers<[1], [0], [0], [1], [0, 0, 1, 1], [], []>} : vector<6x384xbf16>, vector<384x256xbf16>, vector<6x256xf32> -> vector<6x256xf32>
    %c0_3 = arith.constant 0 : index
    %c0_4 = arith.constant 0 : index
    %3 = vector.load %arg2[%c0_3, %c0_4] : memref<24x8xbf16, #tpu.memory_space<vmem>>, vector<24x8xbf16>
    %c0_5 = arith.constant 0 : index
    %c0_6 = arith.constant 0 : index
    %4 = vector.load %arg4[%c0_5, %c0_6] : memref<8x256xbf16, #tpu.memory_space<vmem>>, vector<8x256xbf16>
    %cst_7 = arith.constant dense<0.000000e+00> : vector<24x256xf32>
    %5 = tpu.matmul %3, %4, %cst_7 {dimension_numbers = #tpu.dot_dimension_numbers<[1], [0], [0], [1], [0, 0, 1, 1], [], []>} : vector<24x8xbf16>, vector<8x256xbf16>, vector<24x256xf32> -> vector<24x256xf32>
    %c0_8 = arith.constant 0 : index
    %c0_9 = arith.constant 0 : index
    %6 = vector.load %arg5[%c0_8, %c0_9] : memref<2x256xbf16, #tpu.memory_space<vmem>>, vector<2x256xbf16>
    %7 = arith.extf %6 : vector<2x256xbf16> to vector<2x256xf32>
    %c0_10 = arith.constant 0 : index
    %c0_11 = arith.constant 0 : index
    %8 = vector.load %arg6[%c0_10, %c0_11] : memref<3x256xbf16, #tpu.memory_space<vmem>>, vector<3x256xbf16>
    %9 = arith.extf %8 : vector<3x256xbf16> to vector<3x256xf32>
    %10 = vector.extract_strided_slice %5 {offsets = [0, 0], sizes = [12, 256], strides = [1, 1]} : vector<24x256xf32> to vector<12x256xf32>
    %11 = vector.extract_strided_slice %10 {offsets = [9, 0], sizes = [3, 256], strides = [1, 1]} : vector<12x256xf32> to vector<3x256xf32>
    %12 = vector.extract_strided_slice %2 {offsets = [0, 0], sizes = [1, 256], strides = [1, 1]} : vector<6x256xf32> to vector<1x256xf32>
    %13 = vector.extract_strided_slice %7 {offsets = [0, 0], sizes = [1, 256], strides = [1, 1]} : vector<2x256xf32> to vector<1x256xf32>
    %14 = vector.extract_strided_slice %9 {offsets = [0, 0], sizes = [1, 256], strides = [1, 1]} : vector<3x256xf32> to vector<1x256xf32>
    %15 = arith.mulf %13, %14 : vector<1x256xf32>
    %16 = arith.addf %12, %15 : vector<1x256xf32>
    %17 = vector.extract_strided_slice %10 {offsets = [0, 0], sizes = [3, 256], strides = [1, 1]} : vector<12x256xf32> to vector<3x256xf32>
    %18 = vector.broadcast %16 : vector<1x256xf32> to vector<3x256xf32>
    %19 = arith.mulf %17, %18 : vector<3x256xf32>
    %20 = arith.addf %11, %19 : vector<3x256xf32>
    %21 = vector.extract_strided_slice %2 {offsets = [1, 0], sizes = [1, 256], strides = [1, 1]} : vector<6x256xf32> to vector<1x256xf32>
    %22 = vector.extract_strided_slice %7 {offsets = [0, 0], sizes = [1, 256], strides = [1, 1]} : vector<2x256xf32> to vector<1x256xf32>
    %23 = vector.extract_strided_slice %9 {offsets = [1, 0], sizes = [1, 256], strides = [1, 1]} : vector<3x256xf32> to vector<1x256xf32>
    %24 = arith.mulf %22, %23 : vector<1x256xf32>
    %25 = arith.addf %21, %24 : vector<1x256xf32>
    %26 = vector.extract_strided_slice %10 {offsets = [3, 0], sizes = [3, 256], strides = [1, 1]} : vector<12x256xf32> to vector<3x256xf32>
    %27 = vector.broadcast %25 : vector<1x256xf32> to vector<3x256xf32>
    %28 = arith.mulf %26, %27 : vector<3x256xf32>
    %29 = arith.addf %20, %28 : vector<3x256xf32>
    %30 = vector.extract_strided_slice %2 {offsets = [2, 0], sizes = [1, 256], strides = [1, 1]} : vector<6x256xf32> to vector<1x256xf32>
    %31 = vector.extract_strided_slice %7 {offsets = [0, 0], sizes = [1, 256], strides = [1, 1]} : vector<2x256xf32> to vector<1x256xf32>
    %32 = vector.extract_strided_slice %9 {offsets = [2, 0], sizes = [1, 256], strides = [1, 1]} : vector<3x256xf32> to vector<1x256xf32>
    %33 = arith.mulf %31, %32 : vector<1x256xf32>
    %34 = arith.addf %30, %33 : vector<1x256xf32>
    %35 = vector.extract_strided_slice %10 {offsets = [6, 0], sizes = [3, 256], strides = [1, 1]} : vector<12x256xf32> to vector<3x256xf32>
    %36 = vector.broadcast %34 : vector<1x256xf32> to vector<3x256xf32>
    %37 = arith.mulf %35, %36 : vector<3x256xf32>
    %38 = arith.addf %29, %37 : vector<3x256xf32>
    %c0_12 = arith.constant 0 : index
    %c0_13 = arith.constant 0 : index
    %39 = vector.load %arg7[%c0_12, %c0_13] : memref<6x256xf32, #tpu.memory_space<vmem>>, vector<3x256xf32>
    tpu.vector_store %arg7[%c0_12, %c0_13], %38 {strides = array<i32>} : memref<6x256xf32, #tpu.memory_space<vmem>>, vector<3x256xf32>,
    %40 = vector.extract_strided_slice %5 {offsets = [12, 0], sizes = [12, 256], strides = [1, 1]} : vector<24x256xf32> to vector<12x256xf32>
    %41 = vector.extract_strided_slice %40 {offsets = [9, 0], sizes = [3, 256], strides = [1, 1]} : vector<12x256xf32> to vector<3x256xf32>
    %42 = vector.extract_strided_slice %2 {offsets = [3, 0], sizes = [1, 256], strides = [1, 1]} : vector<6x256xf32> to vector<1x256xf32>
    %43 = vector.extract_strided_slice %7 {offsets = [1, 0], sizes = [1, 256], strides = [1, 1]} : vector<2x256xf32> to vector<1x256xf32>
    %44 = vector.extract_strided_slice %9 {offsets = [0, 0], sizes = [1, 256], strides = [1, 1]} : vector<3x256xf32> to vector<1x256xf32>
    %45 = arith.mulf %43, %44 : vector<1x256xf32>
    %46 = arith.addf %42, %45 : vector<1x256xf32>
    %47 = vector.extract_strided_slice %40 {offsets = [0, 0], sizes = [3, 256], strides = [1, 1]} : vector<12x256xf32> to vector<3x256xf32>
    %48 = vector.broadcast %46 : vector<1x256xf32> to vector<3x256xf32>
    %49 = arith.mulf %47, %48 : vector<3x256xf32>
    %50 = arith.addf %41, %49 : vector<3x256xf32>
    %51 = vector.extract_strided_slice %2 {offsets = [4, 0], sizes = [1, 256], strides = [1, 1]} : vector<6x256xf32> to vector<1x256xf32>
    %52 = vector.extract_strided_slice %7 {offsets = [1, 0], sizes = [1, 256], strides = [1, 1]} : vector<2x256xf32> to vector<1x256xf32>
    %53 = vector.extract_strided_slice %9 {offsets = [1, 0], sizes = [1, 256], strides = [1, 1]} : vector<3x256xf32> to vector<1x256xf32>
    %54 = arith.mulf %52, %53 : vector<1x256xf32>
    %55 = arith.addf %51, %54 : vector<1x256xf32>
    %56 = vector.extract_strided_slice %40 {offsets = [3, 0], sizes = [3, 256], strides = [1, 1]} : vector<12x256xf32> to vector<3x256xf32>
    %57 = vector.broadcast %55 : vector<1x256xf32> to vector<3x256xf32>
    %58 = arith.mulf %56, %57 : vector<3x256xf32>
    %59 = arith.addf %50, %58 : vector<3x256xf32>
    %60 = vector.extract_strided_slice %2 {offsets = [5, 0], sizes = [1, 256], strides = [1, 1]} : vector<6x256xf32> to vector<1x256xf32>
    %61 = vector.extract_strided_slice %7 {offsets = [1, 0], sizes = [1, 256], strides = [1, 1]} : vector<2x256xf32> to vector<1x256xf32>
    %62 = vector.extract_strided_slice %9 {offsets = [2, 0], sizes = [1, 256], strides = [1, 1]} : vector<3x256xf32> to vector<1x256xf32>
    %63 = arith.mulf %61, %62 : vector<1x256xf32>
    %64 = arith.addf %60, %63 : vector<1x256xf32>
    %65 = vector.extract_strided_slice %40 {offsets = [6, 0], sizes = [3, 256], strides = [1, 1]} : vector<12x256xf32> to vector<3x256xf32>
    %66 = vector.broadcast %64 : vector<1x256xf32> to vector<3x256xf32>
    %67 = arith.mulf %65, %66 : vector<3x256xf32>
    %68 = arith.addf %59, %67 : vector<3x256xf32>
    %c3 = arith.constant 3 : index
    %c0_14 = arith.constant 0 : index
    %69 = vector.load %arg7[%c3, %c0_14] : memref<6x256xf32, #tpu.memory_space<vmem>>, vector<3x256xf32>
    tpu.vector_store %arg7[%c3, %c0_14], %68 {strides = array<i32>} : memref<6x256xf32, #tpu.memory_space<vmem>>, vector<3x256xf32>,
    return
  }
  func.func @transform_0(%arg0: i32) -> (i32, i32) {
    %c0_i32 = arith.constant 0 : i32
    %c0_i32_0 = arith.constant 0 : i32
    %c0_i32_1 = arith.constant 0 : i32
    return %c0_i32, %c0_i32_0 : i32, i32
  }
  func.func @transform_1(%arg0: i32) -> (i32, i32) {
    %c0_i32 = arith.constant 0 : i32
    %c0_i32_0 = arith.constant 0 : i32
    %c0_i32_1 = arith.constant 0 : i32
    return %c0_i32, %c0_i32_0 : i32, i32
  }
  func.func @transform_2(%arg0: i32) -> (i32, i32) {
    %c0_i32 = arith.constant 0 : i32
    %c0_i32_0 = arith.constant 0 : i32
    return %c0_i32, %arg0 : i32, i32
  }
  func.func @transform_3(%arg0: i32) -> (i32, i32) {
    %c0_i32 = arith.constant 0 : i32
    %c0_i32_0 = arith.constant 0 : i32
    return %c0_i32, %arg0 : i32, i32
  }
  func.func @transform_4(%arg0: i32) -> (i32, i32) {
    %c0_i32 = arith.constant 0 : i32
    %c0_i32_0 = arith.constant 0 : i32
    return %c0_i32, %arg0 : i32, i32
  }
  func.func @transform_5(%arg0: i32) -> (i32, i32) {
    %c0_i32 = arith.constant 0 : i32
    %c0_i32_0 = arith.constant 0 : i32
    return %c0_i32, %arg0 : i32, i32
  }
  func.func @transform_6(%arg0: i32) -> (i32, i32) {
    %c0_i32 = arith.constant 0 : i32
    %c0_i32_0 = arith.constant 0 : i32
    return %c0_i32, %arg0 : i32, i32
  }
}

</mosaic_0001>

<bundles_post_ra>
// kernel: tpu_custom_call.1
= control target key start
LH: loop header
LB: loop body
LE: loop exit
PB: predicated region body
PF: predicated region fallthrough
CT: control target
= control target key end

     0   :  { %s2092_s0 = inlined_call_operand.hbm [shape: bf16[6,384], index: 0, kind: input, shape index: {}]   ;;  %s2093_s1 = inlined_call_operand.vmem [shape: bf16[24,8], index: 1, kind: input, shape index: {}]   ;;  %s2094_s2 = inlined_call_operand.hbm [shape: bf16[384,512], index: 2, kind: input, shape index: {}]   ;;  %s2095_s3 = inlined_call_operand.vmem [shape: bf16[8,512], index: 3, kind: input, shape index: {}]   ;;  %s2096_s4 = inlined_call_operand.hbm [shape: bf16[2,512], index: 4, kind: input, shape index: {}]   ;;  %s2097_s5 = inlined_call_operand.hbm [shape: bf16[3,512], index: 5, kind: input, shape index: {}]   ;;  %s2098_s6 = inlined_call_operand.hbm [shape: f32[6,512], index: 6, kind: output, shape index: {}]  }
   0x1   :  { %2102 = sst [smem:[#allocation18_spill]] %s2092_s0 }
   0x2   :  { %2103 = sst [smem:[#allocation19_spill]] %s2094_s2 }
   0x3   :  { %11 = vsyncpa [#allocation3], 0 }
   0x4   :  { %12 = vsyncpa [#allocation6], 0 }
   0x5   :  { %14 = vsyncpa [#allocation6 + $0x1], 0 }
   0x6   :  { %15 = vsyncpa [#allocation9], 0 }
   0x7   :  { %17 = vsyncpa [#allocation9 + $0x1], 0 }
   0x8   :  { %18 = vsyncpa [#allocation4], 0 }
   0x9   :  { %20 = vsyncpa [#allocation4 + $0x1], 0  ;;  %s1746_s21 = smov 0   ;;  %s1748_s22 = smov 0  }
   0xa   :  { %s1750_s23 = smov 0   ;;  %s1752_s24 = smov 0  }
   0xb LB: > { %2104 = sst [smem:[#allocation15_spill]] %s1701_s23  ;;  %s1767_s25 = sadd.s32 1, %s1705_s24   ;;  %s1705_s24 = sphi %s1752_s24, %s2116_s24   ;;  %s1701_s23 = sphi %s1750_s23, %s2118_s23   ;;  %s1697_s22 = sphi %s1748_s22, %s2120_s22   ;;  %s1693_s21 = sphi %s1746_s21, %s2119_s21  }
   0xc   : > { %2105 = sst [smem:[#allocation16_spill]] %s1767_s25  ;;  %s75_s26 = sadd.s32 1, %s1701_s23 }
   0xd   : > { %s72_s27 = ssub.s32 %s1705_s24, %s1767_s25  ;;  %p82_p0 = scmp.ne.s32.totalorder %s1701_s23, %s1697_s22 }
   0xe   : > { %p73_p1 = scmp.eq.s32.totalorder %s72_s27, 0  ;;  %p83_p2 = scmp.eq.s32.totalorder %s1705_s24, 0 }
   0xf   : > { %p1472_p4 = scmp.lt.s32.totalorder %s1705_s24, 2  ;;  %s231_s29 = sand.u32 1, %s1705_s24  }
  0x10   : > { %s1778_s28 = scalar_select %p73_p1, %s1701_s23, %s75_s26  }
  0x11   : > { %p84_p5 = por %p83_p2, %p82_p0  ;;  %s1785_s30 = sand.u32 1, %s1701_s23  }
  0x12   : > { %2106 = sst [smem:[#allocation17_spill]] %s1778_s28  ;;  %s1439_s7 = smul.u32 384, %s1785_s30 }
  0x13   : > { %s1387_s8 = sshll.u32 %s1705_s24, 3  ;;  %s2107_s2 = sld [smem:[#allocation19_spill]] }
  0x14   : > { %p1792_p6 = pnand %p1472_p4, %p84_p5  ;;  %s235_s14 = scalar_lea.vmem [#allocation5], %s1439_s7 }
  0x15   : > { %s243_s15 = sshll.u32 %s235_s14, 4  ;;  %s1796_s16 = scalar_lea.sflag [#allocation6], %s231_s29  ;;  %s244_s15 = int_to_ptr.vmem [resolvable:$true] %s243_s15 }
  0x16   : > { %p1515_p8 = pneg %p1792_p6 }
  0x19   : > { %s240_s11 = scalar_lea.hbm %s2107_s2, %s1387_s8  ;;  %s1518_s26 = scalar_lea.hbm %s2107_s2, 768 }
  0x1a   : > { %s241_s13 = sshll.u32 %s240_s11, 4  ;;  %s242_s13 = int_to_ptr.hbm [resolvable:$true] %s241_s13 }
  0x1b   : > { %s1511_s17 = sshra.s32 %s242_s13, 4  ;;  %s1512_s17 = int_to_ptr.hbm [resolvable:$true] %s1511_s17 }
  0x1c   : > { %s1513_s18 = scalar_lea.hbm %s1512_s17, 384  ;;  %p1519_p11 = scmp.lt.s32.totalorder %s1512_s17, %s2107_s2 }
  0x1d   : > { %p1514_p7 = scmp.ne.s32.totalorder %s1512_s17, %s1513_s18  ;;  %p1520_p12 = scmp.lt.s32.totalorder %s1518_s26, %s1513_s18 }
  0x1f   : > { %p1516_p9 = pnand %p1515_p8, %p1514_p7  ;;  %p1521_p13 = por %p1520_p12, %p1519_p11 }
  0x21   : > { %p1517_p10 = pneg %p1516_p9 }
  0x23   : > { %p1522_p1 = pnand %p1521_p13, %p1517_p10 }
  0x25   : > { %1525 = shalt.err (!%p1522_p1)
}
  0x26   : > { %s1707_s29 = smov 256   ;;  %s1708_s8 = smov 128  }
  0x27   : > { %s1709_s9 = smov 8   ;;  %s1813_s10 = sadd.s32 4294967295, %s1705_s24  }
  0x28   : > { %1460 = dma.hbm_to_vmem [thread:$0]  (!%p1792_p6), %s242_s13, 6144, %s244_s15, %s1796_s16, %s1707_s29, %s1708_s8, %s1709_s9  }
  0x29   : > { %s1164_s11 = sadd.s32 4294967294, %s1705_s24   ;;  %p88_p2 = scmp.ne.s32.totalorder %s1697_s22, %s1693_s21 }
  0x2a   : > { %p89_p4 = scmp.eq.s32.totalorder %s1813_s10, 0  ;;  %p190_p5 = scmp.eq.s32.totalorder %s1813_s10, 1 }
  0x2b   : > { %p196_p7 = scmp.eq.s32.totalorder %s1164_s11, 1  ;;  %p1165_p9 = scmp.ge.s32.totalorder %s1705_s24, 1 }
  0x2c   : > { %p1823_p10 = por %p89_p4, %p88_p2  ;;  %p1830_p11 = por %p190_p5, %p82_p0 }
  0x2d   : > { %p1834_p12 = por %p196_p7, %p88_p2  ;;  %p203_p13 = scmp.lt.s32.totalorder %s1705_s24, 3 }
  0x2e   : > { %s2112_s0 = sld [smem:[#allocation18_spill]]  ;;  %s1170_s26 = sshll.u32 %s1785_s30, 1 }
  0x2f   : > { %p1842_p1 = pnand %p1165_p9, %p203_p13  ;;  %s1710_s27 = smov [#allocation2]  }
  0x30   : > { %s217_s7 = sshll.u32 %s1710_s27, 4  ;;  %s1171_s29 = sshll.u32 %s1705_s24, 1  ;;  %s218_s7 = int_to_ptr.vmem [resolvable:$true] %s217_s7 }
  0x31   : > { %p1453_p0 = pneg %p1842_p1  ;;  %s270_s11 = scalar_lea.hbm %s2096_s4, %s1171_s29 }
  0x32   : > { %s266_s17 = scalar_lea.vmem [#allocation7], %s1170_s26  ;;  %s1578_s25 = scalar_lea.hbm %s2096_s4, 4 }
  0x33   : > { %p1454_p2 = pnand %p1453_p0, %p89_p4  ;;  %s274_s18 = sshll.u32 %s266_s17, 4  ;;  %s275_s18 = int_to_ptr.vmem [resolvable:$true] %s274_s18 }
  0x34   : > { %s215_s19 = sshll.u32 %s2112_s0, 4  ;;  %s272_s0 = sshll.u32 %s270_s11, 4  ;;  %s216_s19 = int_to_ptr.hbm [resolvable:$true] %s215_s19  ;;  %s273_s0 = int_to_ptr.hbm [resolvable:$true] %s272_s0 }
  0x35   : > { %1456 = dma.hbm_to_vmem [thread:$0]  (!%p1454_p2), %s216_s19, 192, %s218_s7, [#allocation3]  }
  0x36   : > { %s1571_s2 = sshra.s32 %s273_s0, 4  ;;  %s1572_s2 = int_to_ptr.hbm [resolvable:$true] %s1571_s2 }
  0x37   : > { %s1573_s28 = scalar_lea.hbm %s1572_s2, 2  ;;  %p1579_p13 = scmp.lt.s32.totalorder %s1572_s2, %s2096_s4 }
  0x38   : > { %p1574_p5 = scmp.ne.s32.totalorder %s1572_s2, %s1573_s28  ;;  %p1580_p0 = scmp.lt.s32.totalorder %s1578_s25, %s1573_s28 }
  0x3a   : > { %p1576_p7 = pnand %p1574_p5, %p1515_p8  ;;  %p1581_p2 = por %p1580_p0, %p1579_p13 }
  0x3c   : > { %p1577_p9 = pneg %p1576_p7 }
  0x3e   : > { %p1582_p3 = pnand %p1581_p2, %p1577_p9 }
  0x40   : > { %1585 = shalt.err (!%p1582_p3)
}
  0x41   : > { %1463 = dma.hbm_to_vmem [thread:$0]  (!%p1792_p6), %s273_s0, 32, %s275_s18, %s1796_s16  }
  0x42   : > { %s1172_s19 = sshll.u32 %s1785_s30, 2  ;;  %s1388_s26 = sshll.u32 %s1705_s24, 2 }
  0x43   : > { %s290_s9 = scalar_lea.hbm %s2097_s5, %s1388_s26  ;;  %s285_s11 = scalar_lea.vmem [#allocation8], %s1172_s19 }
  0x44   : > { %s294_s2 = sshll.u32 %s285_s11, 4  ;;  %s292_s25 = sshll.u32 %s290_s9, 4  ;;  %s295_s2 = int_to_ptr.vmem [resolvable:$true] %s294_s2  ;;  %s293_s25 = int_to_ptr.hbm [resolvable:$true] %s292_s25 }
  0x45   : > { %s282_s28 = scalar_lea.sflag [#allocation9], %s1785_s30  ;;  %s1601_s17 = sshra.s32 %s293_s25, 4  ;;  %s1602_s17 = int_to_ptr.hbm [resolvable:$true] %s1601_s17 }
  0x46   : > { %s1603_s27 = scalar_lea.hbm %s1602_s17, 4  ;;  %s1608_s18 = scalar_lea.hbm %s2097_s5, 8 }
  0x47   : > { %p1604_p3 = scmp.ne.s32.totalorder %s1602_s17, %s1603_s27  ;;  %p1609_p9 = scmp.lt.s32.totalorder %s1602_s17, %s2097_s5 }
  0x48   : > { %p1610_p13 = scmp.lt.s32.totalorder %s1608_s18, %s1603_s27 }
  0x49   : > { %p1606_p5 = pnand %p1604_p3, %p1515_p8 }
  0x4a   : > { %p1611_p0 = por %p1610_p13, %p1609_p9 }
  0x4b   : > { %p1607_p7 = pneg %p1606_p5 }
  0x4d   : > { %p1612_p2 = pnand %p1611_p0, %p1607_p7 }
  0x4f   : > { %1615 = shalt.err (!%p1612_p2)
}
  0x50   : > { %1466 = dma.hbm_to_vmem [thread:$0]  (!%p1792_p6), %s293_s25, 64, %s295_s2, %s282_s28  }
  0x51   : > { %303 = sbr.rel (%p1842_p1) target bundleno = 314 (0x13a), region = 44 }
  0x56   : > { %1676 = dma.done.wait (%p89_p4), [#allocation3], 192  }
  0x57   : > { %1678 = vsyncadd (%p89_p4), [#allocation3], 4294967104  ;;  %s310_s30 = sand.u32 1, %s1813_s10   ;;  %s1892_s19 = sand.u32 1, %s1697_s22  }
  0x58   : > { %s1440_s26 = smul.u32 384, %s1892_s19  ;;  %s311_s23 = scalar_lea.sflag [#allocation6], %s310_s30 }
  0x5a   : > { %s1895_s12 = scalar_lea.vmem [#allocation5], %s1440_s26 }
  0x5b   : > { %1680 = dma.done.wait (%p1823_p10), %s311_s23, 6176  }
  0x5c   : > { %1682 = vsyncadd (%p1823_p10), %s311_s23, 4294961120  ;;  %s1177_s20 = sshll.u32 %s1892_s19, 1  ;;  %s1178_s7 = sshll.u32 %s1892_s19, 2 }
  0x5d   : > { %s1903_s9 = scalar_lea.vmem [#allocation7], %s1177_s20  ;;  %s331_s11 = scalar_lea.sflag [#allocation9], %s1892_s19 }
  0x5e   : > { %s1906_s2 = scalar_lea.vmem [#allocation8], %s1178_s7 }
  0x5f   : > { %1684 = dma.done.wait (%p1823_p10), %s331_s11, 64  }
  0x60   : > { %1686 = vsyncadd (%p1823_p10), %s331_s11, 4294967232  ;;  %s1180_s25 = sshll.u32 %s1813_s10, 1  ;;  %v1240_v0 = vld [vmem:[%s1895_s12 + $0x70] sm:$0xf]  ;;  %v1404_v1 = vld [vmem:[%s1895_s12 + $0x74] sm:$0xf0] }
  0x61   : > { %p1915_p6 = scmp.lt.s32.totalorder %s1180_s25, 3  ;;  %v1304_v2 = vld [vmem:[%s1895_s12 + $0xf0] sm:$0xf]  ;;  %v1241_v3 = vor.u32 %v1404_v1, %v1240_v0  ;;  %v1420_v4 = vld [vmem:[%s1895_s12 + $0xf4] sm:$0xf0]  ;;  %vm793_vm0 = vcmask 1043456  }
  0x62   : > { %v1368_v5 = vld [vmem:[%s1895_s12 + $0x170] sm:$0xf]  ;;  %v1436_v6 = vld [vmem:[%s1895_s12 + $0x174] sm:$0xf0]  ;;  %v1305_v7 = vor.u32 %v1420_v4, %v1304_v2  ;;  %v1403_v9 = vld [vmem:[%s1895_s12 + $0x74] sm:$0xf] }
  0x63   : > { %v1369_v8 = vor.u32 %v1436_v6, %v1368_v5  ;;  %v1242_v10 = vld [vmem:[%s1895_s12 + $0x78] sm:$0xf0]  ;;  %v1232_v11 = vld [vmem:[%s1895_s12 + $0x60] sm:$0xf]  ;;  %691 = vmatpush.bf16.msra.mxu0 %v1241_v3  ;;  %v1402_v13 = vld [vmem:[%s1895_s12 + $0x64] sm:$0xf0] }
  0x64   : > { %v1245_v12 = vor.u32 %v1403_v9, %v1242_v10  ;;  %v1296_v14 = vld [vmem:[%s1895_s12 + $0xe0] sm:$0xf]  ;;  %v1418_v15 = vld [vmem:[%s1895_s12 + $0xe4] sm:$0xf0]  ;;  %704 = vmatpush.bf16.msra.mxu1 %v1305_v7  ;;  %v1233_v16 = vor.u32 %v1402_v13, %v1232_v11  ;;  %v1401_v20 = vld [vmem:[%s1895_s12 + $0x64] sm:$0xf] }
  0x65   : > { %717 = vmatpush.bf16.msra.mxu2 %v1369_v8  ;;  %v1297_v17 = vor.u32 %v1418_v15, %v1296_v14  ;;  %v1360_v18 = vld [vmem:[%s1895_s12 + $0x160] sm:$0xf]  ;;  %v1434_v19 = vld [vmem:[%s1895_s12 + $0x164] sm:$0xf0]  ;;  %v1234_v22 = vld [vmem:[%s1895_s12 + $0x68] sm:$0xf0] }
  0x66   : > { %730 = vmatpush.bf16.msra.mxu3 %v1245_v12  ;;  %v1361_v21 = vor.u32 %v1434_v19, %v1360_v18  ;;  %v1224_v23 = vld [vmem:[%s1895_s12 + $0x50] sm:$0xf]  ;;  %v1400_v24 = vld [vmem:[%s1895_s12 + $0x54] sm:$0xf0]  ;;  %v1237_v25 = vor.u32 %v1401_v20, %v1234_v22  ;;  %v1399_v31 = vld [vmem:[%s1895_s12 + $0x54] sm:$0xf] }
  0x67   : > { %v1288_v26 = vld [vmem:[%s1895_s12 + $0xd0] sm:$0xf]  ;;  %v1416_v27 = vld [vmem:[%s1895_s12 + $0xd4] sm:$0xf0]  ;;  %692 = vmatpush.bf16.msra.mxu0 %v1233_v16  ;;  %v1225_v29 = vor.u32 %v1400_v24, %v1224_v23  ;;  %v1226_v32 = vld [vmem:[%s1895_s12 + $0x58] sm:$0xf0] }
  0x68   : > { %v1352_v28 = vld [vmem:[%s1895_s12 + $0x150] sm:$0xf]  ;;  %v1432_v30 = vld [vmem:[%s1895_s12 + $0x154] sm:$0xf0]  ;;  %705 = vmatpush.bf16.msra.mxu1 %v1297_v17  ;;  %v1289_v33 = vor.u32 %v1416_v27, %v1288_v26  ;;  %v1216_v35 = vld [vmem:[%s1895_s12 + $0x40] sm:$0xf]  ;;  %v1229_v38 = vor.u32 %v1399_v31, %v1226_v32 }
  0x69   : > { %718 = vmatpush.bf16.msra.mxu2 %v1361_v21  ;;  %v1353_v34 = vor.u32 %v1432_v30, %v1352_v28  ;;  %v1398_v36 = vld [vmem:[%s1895_s12 + $0x44] sm:$0xf0]  ;;  %v1280_v37 = vld [vmem:[%s1895_s12 + $0xc0] sm:$0xf]  ;;  %v1397_v42 = vld [vmem:[%s1895_s12 + $0x44] sm:$0xf] }
  0x6a   : > { %731 = vmatpush.bf16.msra.mxu3 %v1237_v25  ;;  %v1414_v39 = vld [vmem:[%s1895_s12 + $0xc4] sm:$0xf0]  ;;  %v1344_v40 = vld [vmem:[%s1895_s12 + $0x140] sm:$0xf]  ;;  %v1218_v43 = vld [vmem:[%s1895_s12 + $0x48] sm:$0xf0]  ;;  %v1217_v44 = vor.u32 %v1398_v36, %v1216_v35 }
  0x6b   : > { %v1430_v41 = vld [vmem:[%s1895_s12 + $0x144] sm:$0xf0]  ;;  %693 = vmatpush.bf16.msra.mxu0 %v1225_v29  ;;  %s2122_s25 = smov (!%p1915_p6, %s1180_s25), 3  ;;  %v1281_v45 = vor.u32 %v1414_v39, %v1280_v37  ;;  %v1208_v47 = vld [vmem:[%s1895_s12 + $0x30] sm:$0xf]  ;;  %v1221_v50 = vor.u32 %v1397_v42, %v1218_v43  ;;  %vm786_vm1 = vcmask 64512  }
  0x6c   : > { %706 = vmatpush.bf16.msra.mxu1 %v1289_v33  ;;  %v1345_v46 = vor.u32 %v1430_v41, %v1344_v40  ;;  %v1396_v48 = vld [vmem:[%s1895_s12 + $0x34] sm:$0xf0]  ;;  %v1272_v49 = vld [vmem:[%s1895_s12 + $0xb0] sm:$0xf]  ;;  %v1395_v54 = vld [vmem:[%s1895_s12 + $0x34] sm:$0xf] }
  0x6d   : > { %719 = vmatpush.bf16.msra.mxu2 %v1353_v34  ;;  %v1412_v51 = vld [vmem:[%s1895_s12 + $0xb4] sm:$0xf0]  ;;  %v1336_v52 = vld [vmem:[%s1895_s12 + $0x130] sm:$0xf]  ;;  %v1210_v55 = vld [vmem:[%s1895_s12 + $0x38] sm:$0xf0]  ;;  %v1209_v56 = vor.u32 %v1396_v48, %v1208_v47 }
  0x6e   : > { %732 = vmatpush.bf16.msra.mxu3 %v1229_v38  ;;  %v1428_v53 = vld [vmem:[%s1895_s12 + $0x134] sm:$0xf0]  ;;  %s1181_s14 = sshll.u32 %s2122_s25, 2  ;;  %v1273_v57 = vor.u32 %v1412_v51, %v1272_v49  ;;  %v1200_v59 = vld [vmem:[%s1895_s12 + $0x20] sm:$0xf]  ;;  %v1213_v62 = vor.u32 %v1395_v54, %v1210_v55  ;;  %vm842_vm2 = vcmask 1041408  }
  0x6f   : > { %694 = vmatpush.bf16.msra.mxu0 %v1217_v44  ;;  %v1337_v58 = vor.u32 %v1428_v53, %v1336_v52  ;;  %v1394_v60 = vld [vmem:[%s1895_s12 + $0x24] sm:$0xf0]  ;;  %v1264_v61 = vld [vmem:[%s1895_s12 + $0xa0] sm:$0xf]  ;;  %v1393_v2 = vld [vmem:[%s1895_s12 + $0x24] sm:$0xf]  ;;  %s384_s0 = scalar_lea.vmem %s2095_s3, %s1181_s14 }
  0x70   : > { %707 = vmatpush.bf16.msra.mxu1 %v1281_v45  ;;  %v1410_v63 = vld [vmem:[%s1895_s12 + $0xa4] sm:$0xf0]  ;;  %v1328_v0 = vld [vmem:[%s1895_s12 + $0x120] sm:$0xf]  ;;  %v1202_v3 = vld [vmem:[%s1895_s12 + $0x28] sm:$0xf0]  ;;  %v1201_v4 = vor.u32 %v1394_v60, %v1200_v59 }
  0x71   : > { %720 = vmatpush.bf16.msra.mxu2 %v1345_v46  ;;  %v1426_v1 = vld [vmem:[%s1895_s12 + $0x124] sm:$0xf0]  ;;  %v1265_v5 = vor.u32 %v1410_v63, %v1264_v61  ;;  %v1192_v7 = vld [vmem:[%s1895_s12 + $0x10] sm:$0xf]  ;;  %v1392_v8 = vld [vmem:[%s1895_s12 + $0x14] sm:$0xf0]  ;;  %v1205_v10 = vor.u32 %v1393_v2, %v1202_v3 }
  0x72   : > { %733 = vmatpush.bf16.msra.mxu3 %v1221_v50  ;;  %v1329_v6 = vor.u32 %v1426_v1, %v1328_v0  ;;  %v1256_v9 = vld [vmem:[%s1895_s12 + $0x90] sm:$0xf]  ;;  %v1408_v11 = vld [vmem:[%s1895_s12 + $0x94] sm:$0xf0]  ;;  %v1391_v14 = vld [vmem:[%s1895_s12 + $0x14] sm:$0xf]  ;;  %v1193_v17 = vor.u32 %v1392_v8, %v1192_v7 }
  0x73   : > { %695 = vmatpush.bf16.msra.mxu0 %v1209_v56  ;;  %v1320_v12 = vld [vmem:[%s1895_s12 + $0x110] sm:$0xf]  ;;  %v1424_v13 = vld [vmem:[%s1895_s12 + $0x114] sm:$0xf0]  ;;  %v1194_v15 = vld [vmem:[%s1895_s12 + $0x18] sm:$0xf0]  ;;  %v1257_v21 = vor.u32 %v1408_v11, %v1256_v9 }
  0x74   : > { %708 = vmatpush.bf16.msra.mxu1 %v1273_v57  ;;  %v1184_v16 = vld [vmem:[%s1895_s12] sm:$0xf]  ;;  %v1390_v18 = vld [vmem:[%s1895_s12 + $0x4] sm:$0xf0]  ;;  %v772_v20 = vld [vmem:[%s384_s0] sm:$0xff]  ;;  %v1321_v22 = vor.u32 %v1424_v13, %v1320_v12  ;;  %v1197_v28 = vor.u32 %v1391_v14, %v1194_v15  ;;  %vm910_vm3 = vcmask 1042432  }
  0x75   : > { %721 = vmatpush.bf16.msra.mxu2 %v1337_v58  ;;  %v1248_v19 = vld [vmem:[%s1895_s12 + $0x80] sm:$0xf]  ;;  %v1406_v23 = vld [vmem:[%s1895_s12 + $0x84] sm:$0xf0]  ;;  %v391_v25 = vld [vmem:[#allocation2 + $0x8] sm:$0x7]  ;;  %v782_v26 = vunpack.c.l.b16 %v772_v20  ;;  %v783_v27 = vunpack.c.h.b16 %v772_v20  ;;  %v1185_v35 = vor.u32 %v1390_v18, %v1184_v16 }
  0x76   : > { %734 = vmatpush.bf16.msra.mxu3 %v1213_v62  ;;  %v1312_v24 = vld [vmem:[%s1895_s12 + $0x100] sm:$0xf]  ;;  %v1422_v29 = vld [vmem:[%s1895_s12 + $0x104] sm:$0xf0]  ;;  %v1389_v30 = vld [vmem:[%s1895_s12 + $0x4] sm:$0xf]  ;;  %v1249_v36 = vor.u32 %v1406_v23, %v1248_v19  ;;  %v444_v39 = vunpack.c.l.b16 %v391_v25 }
  0x77   : > { %696 = vmatpush.bf16.msra.mxu0 %v1201_v4  ;;  %v390_v31 = vld [vmem:[#allocation2] sm:$0x77]  ;;  %v1186_v32 = vld [vmem:[%s1895_s12 + $0x8] sm:$0xf0]  ;;  %v1306_v34 = vld [vmem:[%s1895_s12 + $0xf8] sm:$0xf0]  ;;  %v784_v40 = vpack.c.b16 %v782_v26, %v782_v26  ;;  %v1313_v41 = vor.u32 %v1422_v29, %v1312_v24  ;;  %v785_v43 = vpack.c.b16 %v783_v27, %v783_v27 }
  0x78   : > { %709 = vmatpush.bf16.msra.mxu1 %v1265_v5  ;;  %v1419_v33 = vld [vmem:[%s1895_s12 + $0xf4] sm:$0xf]  ;;  %v1370_v38 = vld [vmem:[%s1895_s12 + $0x178] sm:$0xf0]  ;;  %v442_v42 = vunpack.c.l.b16 %v390_v31  ;;  %v1189_v44 = vor.u32 %v1389_v30, %v1186_v32  ;;  %v443_v46 = vunpack.c.h.b16 %v390_v31  ;;  %v1417_v48 = vld [vmem:[%s1895_s12 + $0xe4] sm:$0xf]  ;;  %v1999_v50 = vpack.c.b16 %v444_v39, %v444_v39 }
  0x79   : > { %722 = vmatpush.bf16.msra.mxu2 %v1329_v6  ;;  %v1435_v37 = vld [vmem:[%s1895_s12 + $0x174] sm:$0xf]  ;;  %v1309_v45 = vor.u32 %v1419_v33, %v1306_v34  ;;  %v1298_v49 = vld [vmem:[%s1895_s12 + $0xe8] sm:$0xf0]  ;;  %v795_v51 = vsel %vm793_vm0, %v784_v40, 0  ;;  %v798_v55 = vsel %vm793_vm0, %v785_v43, 0 }
  0x7a   : > { %735 = vmatpush.bf16.msra.mxu3 %v1205_v10  ;;  %v1373_v47 = vor.u32 %v1435_v37, %v1370_v38  ;;  %v1433_v52 = vld [vmem:[%s1895_s12 + $0x164] sm:$0xf]  ;;  %v1362_v53 = vld [vmem:[%s1895_s12 + $0x168] sm:$0xf0]  ;;  %v445_v54 = vpack.c.b16 %v442_v42, %v442_v42  ;;  %v1301_v56 = vor.u32 %v1417_v48, %v1298_v49  ;;  %v2005_v57 = vpack.c.b16 %v443_v46, %v443_v46  ;;  %v1415_v59 = vld [vmem:[%s1895_s12 + $0xd4] sm:$0xf] }
  0x7b   : > { %697 = vmatpush.bf16.msra.mxu0 %v1193_v17  ;;  %v1365_v58 = vor.u32 %v1433_v52, %v1362_v53  ;;  %v1290_v60 = vld [vmem:[%s1895_s12 + $0xd8] sm:$0xf0]  ;;  %v1431_v61 = vld [vmem:[%s1895_s12 + $0x154] sm:$0xf]  ;;  %v1413_v1 = vld [vmem:[%s1895_s12 + $0xc4] sm:$0xf] }
  0x7c   : > { %710 = vmatpush.bf16.msra.mxu1 %v1257_v21  ;;  %v1354_v62 = vld [vmem:[%s1895_s12 + $0x158] sm:$0xf0]  ;;  %v1293_v63 = vor.u32 %v1415_v59, %v1290_v60  ;;  %v1282_v2 = vld [vmem:[%s1895_s12 + $0xc8] sm:$0xf0]  ;;  %v1429_v3 = vld [vmem:[%s1895_s12 + $0x144] sm:$0xf] }
  0x7d   : > { %723 = vmatpush.bf16.msra.mxu2 %v1321_v22  ;;  %v1357_v0 = vor.u32 %v1431_v61, %v1354_v62  ;;  %v1346_v4 = vld [vmem:[%s1895_s12 + $0x148] sm:$0xf0]  ;;  %v1285_v5 = vor.u32 %v1413_v1, %v1282_v2  ;;  %v1411_v7 = vld [vmem:[%s1895_s12 + $0xb4] sm:$0xf]  ;;  %v1274_v8 = vld [vmem:[%s1895_s12 + $0xb8] sm:$0xf0] }
  0x7e   : > { %736 = vmatpush.bf16.msra.mxu3 %v1197_v28  ;;  %v1349_v6 = vor.u32 %v1429_v3, %v1346_v4  ;;  %v1427_v9 = vld [vmem:[%s1895_s12 + $0x134] sm:$0xf]  ;;  %v1338_v10 = vld [vmem:[%s1895_s12 + $0x138] sm:$0xf0]  ;;  %v1277_v11 = vor.u32 %v1411_v7, %v1274_v8  ;;  %v1409_v13 = vld [vmem:[%s1895_s12 + $0xa4] sm:$0xf] }
  0x7f   : > { %698 = vmatpush.bf16.msra.mxu0 %v1185_v35  ;;  %v1341_v12 = vor.u32 %v1427_v9, %v1338_v10  ;;  %v1266_v14 = vld [vmem:[%s1895_s12 + $0xa8] sm:$0xf0]  ;;  %v1425_v16 = vld [vmem:[%s1895_s12 + $0x124] sm:$0xf]  ;;  %v1407_v20 = vld [vmem:[%s1895_s12 + $0x94] sm:$0xf] }
  0x80   : > { %711 = vmatpush.bf16.msra.mxu1 %v1249_v36  ;;  %v1437_v15 = vld [vmem:[%s2093_s1] sm:$0xff]  ;;  %v1269_v18 = vor.u32 %v1409_v13, %v1266_v14  ;;  %v1258_v21 = vld [vmem:[%s1895_s12 + $0x98] sm:$0xf0]  ;;  %v1423_v22 = vld [vmem:[%s1895_s12 + $0x114] sm:$0xf]  ;;  %vm966_vm4 = vcmask 1045504  }
  0x81   : > { %724 = vmatpush.bf16.msra.mxu2 %v1313_v41  ;;  %v1330_v17 = vld [vmem:[%s1895_s12 + $0x128] sm:$0xf0]  ;;  %v1322_v23 = vld [vmem:[%s1895_s12 + $0x118] sm:$0xf0]  ;;  %v1261_v24 = vor.u32 %v1407_v20, %v1258_v21  ;;  %v1405_v26 = vld [vmem:[%s1895_s12 + $0x84] sm:$0xf] }
  0x82   : > { %737 = vmatpush.bf16.msra.mxu3 %v1189_v44  ;;  %699 = vmatmul.bf16.vlgmr.msra.gmra.mxu0 %v445_v54  ;;  %v1333_v19 = vor.u32 %v1425_v16, %v1330_v17  ;;  %v1325_v25 = vor.u32 %v1423_v22, %v1322_v23  ;;  %v1250_v27 = vld [vmem:[%s1895_s12 + $0x88] sm:$0xf0]  ;;  %v1421_v28 = vld [vmem:[%s1895_s12 + $0x104] sm:$0xf]  ;;  %v771_v30 = vld [vmem:[%s2093_s1 + $0x8] sm:$0xf] }
  0x83   : > { %743 = vmatpush.bf16.msrb.mxu0 %v1309_v45  ;;  %712 = vmatmul.bf16.vlgmr.msra.gmra.mxu1 %v2005_v57  ;;  %v1314_v29 = vld [vmem:[%s1895_s12 + $0x108] sm:$0xf0]  ;;  %v1253_v31 = vor.u32 %v1405_v26, %v1250_v27  ;;  %v778_v33 = vunpack.c.l.b16 %v771_v30  ;;  %v838_v35 = vld [vmem:[%s1906_s2] sm:$0xf]  ;;  %v836_v42 = vld [vmem:[%s1903_s9] sm:$0x3] }
  0x84   : > { %756 = vmatpush.bf16.msrb.mxu1 %v1373_v47  ;;  %725 = vmatmul.bf16.vlgmr.msra.gmra.mxu2 %v1999_v50  ;;  %v1317_v32 = vor.u32 %v1421_v28, %v1314_v29  ;;  %v839_v36 = vunpack.c.l.bf16 %v838_v35  ;;  %v837_v46 = vunpack.c.l.bf16 %v836_v42  ;;  %s1179_s30 = sshll.u32 %s1892_s19, 4  ;;  %s1438_s23 = sshll.u32 %s1813_s10, 4 }
  0x85   : > { %807 = vmatpush.bf16.msrb.mxu2 %v795_v51  ;;  %738 = vmatmul.bf16.vlgmr.msra.gmra.mxu3 %v445_v54  ;;  %v780_v34 = vpack.c.b16 %v778_v33, %v778_v33  ;;  %s2049_s26 = scalar_lea.vmem [#allocation10], %s1179_s30  ;;  %s1022_s7 = scalar_lea.hbm %s2098_s6, %s1438_s23 }
  0x86   : > { %825 = vmatpush.bf16.msrb.mxu3 %v798_v55  ;;  %888 = vst.sshfl [vmem:[#allocation1] sm:$0xff pattern:$0x75643120] %v839_v36  ;;  %v841_v38 = vrot.slane %v839_v36, 2  ;;  %s1024_s10 = sshll.u32 %s2049_s26, 4  ;;  %s1026_s9 = sshll.u32 %s1022_s7, 4  ;;  %s1025_s10 = int_to_ptr.vmem [resolvable:$true] %s1024_s10  ;;  %s1027_s9 = int_to_ptr.hbm [resolvable:$true] %s1026_s9 }
  0x87   : > { %744 = vmatpush.bf16.msrb.mxu0 %v1301_v56  ;;  %s1011_s11 = scalar_lea.sflag [#allocation4], %s1892_s19  ;;  %s1645_s2 = sshra.s32 %s1027_s9, 4  ;;  %s1646_s2 = int_to_ptr.hbm [resolvable:$true] %s1645_s2 }
  0x88   : > { %757 = vmatpush.bf16.msrb.mxu1 %v1365_v58  ;;  %v843_v41 = vsel %vm842_vm2, %v839_v36, %v841_v38  ;;  %s1647_s25 = scalar_lea.hbm %s1646_s2, 16  ;;  %s1651_s17 = scalar_lea.hbm %s2098_s6, 32 }
  0x89   : > { %v865_v43 = vrot.slane %v843_v41, 7  ;;  %v845_v51 = vmul.f32 %v843_v41, %v837_v46  ;;  %p1648_p8 = scmp.ne.s32.totalorder %s1646_s2, %s1647_s25  ;;  %p1652_p1 = scmp.lt.s32.totalorder %s1646_s2, %s2098_s6 }
  0x8a   : > { %p1653_p3 = scmp.lt.s32.totalorder %s1651_s17, %s1647_s25 }
  0x8b   : > { %745 = vmatpush.bf16.msrb.mxu0 %v1293_v63  ;;  %v866_v48 = vrot.slane %v865_v43, 2  ;;  %v847_v56 = vperm.slane %v845_v51, 0  ;;  %v930_v62 = vmul.f32 %v865_v43, %v837_v46  ;;  %p1649_p4 = pnand %p1648_p8, %p1830_p11 }
  0x8c   : > { %758 = vmatpush.bf16.msrb.mxu1 %v1357_v0  ;;  %p1654_p5 = por %p1653_p3, %p1652_p1 }
  0x8d   : > { %v890_v37 = vld [vmem:[#allocation1 + $0x1] ss:$2 sm:$0xff]  ;;  %v868_v52 = vmul.f32 %v866_v48, %v837_v46  ;;  %p1650_p10 = pneg %p1649_p4 }
  0x8e   : > { %977 = vst.sshfl [vmem:[#allocation1] sm:$0xff pattern:$0x75643120] %v839_v36 }
  0x8f   : > { %746 = vmatpush.bf16.msrb.mxu0 %v1285_v5  ;;  %v870_v58 = vperm.slane %v868_v52, 0  ;;  %v932_v5 = vperm.slane %v930_v62, 1  ;;  %v871_v13 = vperm.slane %v868_v52, 2  ;;  %p1655_p7 = pnand %p1654_p5, %p1650_p10 }
  0x90   : > { %759 = vmatpush.bf16.msrb.mxu1 %v1349_v6  ;;  %v950_v6 = vperm.slane %v845_v51, 1 }
  0x93   : > { %747 = vmatpush.bf16.msrb.mxu0 %v1277_v11 }
  0x94   : > { %760 = vmatpush.bf16.msrb.mxu1 %v1341_v12  ;;  %1378 = vmatmul.msk.bf16.vlgmr.msrb.gmra.mxu2 %vm786_vm1, %v1437_v15 }
  0x95   : > { %1380 = vmatmul.msk.bf16.vlgmr.msrb.gmra.mxu3 %vm786_vm1, %v1437_v15  ;;  %v979_v59 = vld [vmem:[#allocation1 + $0x1] ss:$2 sm:$0xff] }
  0x96   : > { %v980_v63 = vrot.slane %v979_v59, 7 }
  0x97   : > { %748 = vmatpush.bf16.msrb.mxu0 %v1269_v18 }
  0x98   : > { %761 = vmatpush.bf16.msrb.mxu1 %v1333_v19  ;;  %v982_v7 = vmul.f32 %v980_v63, %v837_v46  ;;  %v848_v19 = vperm.slane %v845_v51, 2 }
  0x9a   : > { %v984_v15 = vperm.slane %v982_v7, 1  ;;  %v985_v26 = vperm.slane %v982_v7, 3 }
  0x9b   : > { %749 = vmatpush.bf16.msrb.mxu0 %v1261_v24  ;;  %v933_v24 = vperm.slane %v930_v62, 3 }
  0x9c   : > { %762 = vmatpush.bf16.msrb.mxu1 %v1325_v25  ;;  %v951_v25 = vperm.slane %v845_v51, 3 }
  0x9f   : > { %750 = vmatpush.bf16.msrb.mxu0 %v1253_v31 }
  0xa0   : > { %763 = vmatpush.bf16.msrb.mxu1 %v1317_v32 }
  0xa2   : > { %751 = vmatmul.bf16.vlgmr.msrb.gmra.mxu0 %v2005_v57  ;;  %v892_v57 = vmul.f32 %v890_v37, %v837_v46 }
  0xa3   : > { %764 = vmatmul.bf16.vlgmr.msrb.gmra.mxu1 %v1999_v50 }
  0xa4   : > { %1379 = vmatmul.msk.bf16.gmra.mxu2 %vm786_vm1, %v780_v34  ;;  %v894_v61 = vperm.slane %v892_v57, 0  ;;  %v895_v20 = vperm.slane %v892_v57, 2 }
  0xa5   : > { %1381 = vmatmul.msk.bf16.gmra.mxu3 %vm786_vm1, %v780_v34 }
  0xff   : > { %v700_v39 = vpop.f32.mrf.mxu0 }
 0x100   : > { %v713_v40 = vpop.f32.mrf.mxu1 }
 0x101   : > { %v714_v50 = vadd.f32 %v713_v40, %v700_v39 }
 0x107   : > { %v726_v44 = vpop.f32.mrf.mxu2  ;;  %v702_v47 = vpop.f32.mrf.mxu0 }
 0x108   : > { %v739_v45 = vpop.f32.mrf.mxu3  ;;  %v715_v49 = vpop.f32.mrf.mxu1  ;;  %v727_v54 = vadd.f32 %v726_v44, %v714_v50 }
 0x10a   : > { %v851_v60 = vadd.f32 %v847_v56, %v727_v54  ;;  %v874_v0 = vadd.f32 %v870_v58, %v727_v54  ;;  %v898_v3 = vadd.f32 %v894_v61, %v727_v54  ;;  %v936_v12 = vadd.f32 %v932_v5, %v727_v54 }
 0x10b   : > { %v954_v14 = vadd.f32 %v950_v6, %v727_v54  ;;  %v988_v34 = vadd.f32 %v984_v15, %v727_v54 }
 0x10c   : > { %v853_v2 = vperm.slane %v851_v60, 0  ;;  %v876_v9 = vperm.slane %v874_v0, 1  ;;  %v900_v11 = vperm.slane %v898_v3, 2  ;;  %v938_v30 = vperm.slane %v936_v12, 3 }
 0x10d   : > { %v956_v33 = vperm.slane %v954_v14, 4  ;;  %v990_v54 = vperm.slane %v988_v34, 5 }
 0x10f   : > { %v728_v53 = vpop.f32.mrf.mxu2 }
 0x110   : > { %v741_v55 = vpop.f32.mrf.mxu3 }
 0x117   : > { %v809_v1 = vpop.f32.mrf.mxu2 }
 0x118   : > { %v827_v4 = vpop.f32.mrf.mxu3  ;;  %v855_v8 = vmul.f32 %v853_v2, %v809_v1  ;;  %v878_v10 = vmul.f32 %v876_v9, %v809_v1  ;;  %v902_v17 = vmul.f32 %v900_v11, %v809_v1 }
 0x11a   : > { %v859_v16 = vrot.slane %v855_v8, 7  ;;  %v882_v27 = vrot.slane %v878_v10, 2  ;;  %v911_v35 = vrot.slane %v902_v17, 5 }
 0x11f   : > { %v752_v18 = vpop.f32.mrf.mxu0  ;;  %v811_v23 = vpop.f32.mrf.mxu2 }
 0x120   : > { %v753_v21 = vadd.f32 %v752_v18, %v739_v45  ;;  %v765_v22 = vpop.f32.mrf.mxu1  ;;  %v863_v28 = vadd.f32 %v859_v16, %v811_v23  ;;  %v904_v29 = vmul.f32 %v900_v11, %v811_v23  ;;  %v829_v31 = vpop.f32.mrf.mxu3  ;;  %v940_v38 = vmul.f32 %v938_v30, %v811_v23 }
 0x121   : > { %v958_v44 = vmul.f32 %v956_v33, %v811_v23 }
 0x122   : > { %v766_v32 = vadd.f32 %v765_v22, %v753_v21  ;;  %v886_v36 = vadd.f32 %v882_v27, %v863_v28  ;;  %v912_v37 = vrot.slane %v904_v29, 5  ;;  %v944_v53 = vrot.slane %v940_v38, 7 }
 0x123   : > { %v967_v6 = vrot.slane %v958_v44, 2 }
 0x124   : > { %v852_v39 = vadd.f32 %v848_v19, %v766_v32  ;;  %v875_v40 = vadd.f32 %v871_v13, %v766_v32  ;;  %v899_v41 = vadd.f32 %v895_v20, %v766_v32  ;;  %v937_v42 = vadd.f32 %v933_v24, %v766_v32 }
 0x125   : > { %v913_v43 = vsel %vm910_vm3, %v911_v35, %v912_v37  ;;  %v955_v45 = vadd.f32 %v951_v25, %v766_v32  ;;  %v989_v46 = vadd.f32 %v985_v26, %v766_v32 }
 0x126   : > { %v919_v47 = vadd.f32 %v913_v43, %v886_v36  ;;  %v854_v48 = vperm.slane %v852_v39, 0  ;;  %v877_v49 = vperm.slane %v875_v40, 1  ;;  %v901_v50 = vperm.slane %v899_v41, 2 }
 0x127   : > { %v939_v51 = vperm.slane %v937_v42, 3  ;;  %v754_v52 = vpop.f32.mrf.mxu0  ;;  %v957_v55 = vperm.slane %v955_v45, 4  ;;  %v814_v61 = vpop.f32.mrf.mxu2  ;;  %v991_v2 = vperm.slane %v989_v46, 5 }
 0x128   : > { %v923_v56 = vrot.slane %v919_v47, 1  ;;  %v856_v57 = vmul.f32 %v854_v48, %v827_v4  ;;  %v879_v58 = vmul.f32 %v877_v49, %v827_v4  ;;  %v903_v59 = vmul.f32 %v901_v50, %v827_v4  ;;  %v767_v60 = vpop.f32.mrf.mxu1  ;;  %v832_v1 = vpop.f32.mrf.mxu3 }
 0x129   : > { %v905_v62 = vmul.f32 %v901_v50, %v829_v31  ;;  %v941_v63 = vmul.f32 %v939_v51, %v829_v31  ;;  %v960_v0 = vmul.f32 %v956_v33, %v814_v61  ;;  %v992_v7 = vmul.f32 %v990_v54, %v814_v61 }
 0x12a   : > { %927 = vst [vmem:[%s2049_s26] sm:$0x7] %v923_v56  ;;  %v860_v3 = vrot.slane %v856_v57, 7  ;;  %v914_v5 = vrot.slane %v903_v59, 5  ;;  %v959_v4 = vmul.f32 %v957_v55, %v829_v31  ;;  %v883_v12 = vrot.slane %v879_v58, 2 }
 0x12b   : > { %v915_v8 = vrot.slane %v905_v62, 5  ;;  %v968_v9 = vrot.slane %v960_v0, 2  ;;  %v945_v10 = vrot.slane %v941_v63, 7  ;;  %v948_v13 = vadd.f32 %v944_v53, %v814_v61 }
 0x12c   : > { %v864_v11 = vadd.f32 %v860_v3, %v829_v31  ;;  %v961_v14 = vmul.f32 %v957_v55, %v832_v1  ;;  %v970_v17 = vrot.slane %v959_v4, 2  ;;  %v993_v18 = vmul.f32 %v991_v2, %v832_v1 }
 0x12d   : > { %v969_v15 = vsel %vm966_vm4, %v967_v6, %v968_v9  ;;  %v949_v16 = vadd.f32 %v945_v10, %v832_v1  ;;  %v996_v21 = vrot.slane %v992_v7, 5  ;;  %v916_v23 = vsel %vm910_vm3, %v914_v5, %v915_v8 }
 0x12e   : > { %v887_v19 = vadd.f32 %v883_v12, %v864_v11  ;;  %v975_v20 = vadd.f32 %v969_v15, %v948_v13  ;;  %v971_v22 = vrot.slane %v961_v14, 2  ;;  %v997_v29 = vrot.slane %v993_v18, 5 }
 0x12f   : > { %v816_v27 = vpop.f32.mrf.mxu2 }
 0x130   : > { %v920_v24 = vadd.f32 %v916_v23, %v887_v19  ;;  %v1000_v25 = vadd.f32 %v996_v21, %v975_v20  ;;  %v972_v26 = vsel %vm966_vm4, %v970_v17, %v971_v22  ;;  %v834_v30 = vpop.f32.mrf.mxu3 }
 0x131   : > { %v976_v28 = vadd.f32 %v972_v26, %v949_v16 }
 0x132   : > { %v924_v31 = vrot.slane %v920_v24, 1  ;;  %v1004_v32 = vrot.slane %v1000_v25, 2 }
 0x133   : > { %v1001_v33 = vadd.f32 %v997_v29, %v976_v28 }
 0x134   : > { %928 = vst [vmem:[%s2049_s26 + $0x8] sm:$0x7] %v924_v31 }
 0x135   : > { %1008 = vst [vmem:[%s2049_s26] sm:$0x38] %v1004_v32  ;;  %v1005_v34 = vrot.slane %v1001_v33, 2 }
 0x137   : > { %1009 = vst [vmem:[%s2049_s26 + $0x8] sm:$0x38] %v1005_v34 }
 0x138   : > { %1658 = shalt.err (!%p1655_p7)
}
 0x139   : > { %1451 = dma.vmem_to_hbm [thread:$0]  (%p1830_p11), %s1025_s10, 256, %s1027_s9, %s1011_s11  }
 0x13a PF: > { %s1038_s19 = sand.u32 1, %s1693_s21   ;;  %p2115_p9 = scmp.ge.s32.totalorder %s1705_s24, 2 }
 0x13b   : > { %s1039_s16 = scalar_lea.sflag [#allocation4], %s1038_s19 }
 0x13c   : > { %p1468_p13 = pnand %p2115_p9, %p1834_p12 }
 0x13e   : > { %p1469_p0 = pneg %p1468_p13 }
 0x140   : > { %1688 = dma.done.wait (%p1469_p0), %s1039_s16, 256  }
 0x141   : > { %1690 = vsyncadd (%p1469_p0), %s1039_s16, 4294967040  ;;  %s2116_s24 = sld [smem:[#allocation16_spill]]  ;;  %s2119_s21 = smov %s1697_s22 }
 0x142   : > { %s2117_s18 = sld [smem:[#allocation15_spill]] }
 0x143   : > { %s2118_s23 = sld [smem:[#allocation17_spill]] }
 0x147   : > { %p23_p2 = scmp.ge.s32.totalorder %s2116_s24, 4  }
 0x148   : > { %s2120_s22 = smov %s2117_s18 }
 0x149   :  { %25 = sbr.rel (!%p23_p2) target bundleno = 11 (0xb), region = 123 }
 0x14e   :  { %1045 = vsyncpa [#allocation3], 1 }
 0x14f   :  { %1047 = vsyncpa [#allocation3 + $0x1], 1 }
 0x150   :  { %1048 = vsyncpa [#allocation6], 1 }
 0x151   :  { %1050 = vsyncpa [#allocation6 + $0x1], 1 }
 0x152   :  { %1051 = vsyncpa [#allocation9], 1 }
 0x153   :  { %1053 = vsyncpa [#allocation9 + $0x1], 1 }
 0x154   :  { %1054 = vsyncpa [#allocation4], 1 }
 0x155   :  { %1056 = vsyncpa [#allocation4 + $0x1], 1 }

</bundles_post_ra>
